<compile_context>
chip_gen: v7x
topology: tpu7x:2x2x1
jax: 0.10.0
libtpu: 0.0.40
codegen_flags: <defaults>
</compile_context>

<pallas_src>
import functools

import jax
import jax.numpy as jnp
from jax.experimental import pallas as pl
from jax.experimental.pallas import tpu as pltpu


# ---------------------------------------------------------------------------
# Kernels
# ---------------------------------------------------------------------------

def _gbn_fused_kernel(x_ref, w_ref, b_ref, o_ref, *, eps, group_len):
    # x_ref: (BN, G, cpg, HW); w_ref/b_ref: (G, cpg, 1); o_ref: (BN, G, cpg, HW)
    x = x_ref[...].astype(jnp.float32)
    # Single pass over the block: sum and sum-of-squares (f32 accumulation).
    # Reduce the lane axis (HW) first, then the sublane axis (cpg).
    s = jnp.sum(jnp.sum(x, axis=3, keepdims=True), axis=2, keepdims=True)
    sq = jnp.sum(jnp.sum(x * x, axis=3, keepdims=True), axis=2, keepdims=True)
    lf = jnp.float32(group_len)
    mean = s / lf                                               # (BN, G, 1, 1)
    # torch.std default is unbiased (divide by L - 1).
    var = (sq - lf * mean * mean) / jnp.float32(group_len - 1)
    std = jnp.sqrt(jnp.maximum(var, 0.0))
    inv = pl.reciprocal(std + jnp.float32(eps))                 # tiny, exact
    # Fold the per-channel affine into one scale/shift FMA over the block.
    w = w_ref[...].astype(jnp.float32)[None]                    # (1, G, cpg, 1)
    b = b_ref[...].astype(jnp.float32)[None]                    # (1, G, cpg, 1)
    scale = w * inv                                             # (BN, G, cpg, 1)
    shift = b - mean * scale                                    # (BN, G, cpg, 1)
    o_ref[...] = (x * scale + shift).astype(o_ref.dtype)


def _gbn_stats_kernel(x_ref, s_ref):
    # x_ref: (1, G, cpg, TH); s_ref: (1, 2, G, 1, 1), resident across tile axis.
    k = pl.program_id(1)

    @pl.when(k == 0)
    def _():
        s_ref[...] = jnp.zeros_like(s_ref)

    x = x_ref[0].astype(jnp.float32)                            # (G, cpg, TH)
    s_ref[0, 0] += jnp.sum(x, axis=(1, 2), keepdims=True)       # (G, 1, 1)
    s_ref[0, 1] += jnp.sum(x * x, axis=(1, 2), keepdims=True)   # (G, 1, 1)


def _gbn_norm_kernel(stats_ref, w_ref, b_ref, x_ref, o_ref, *, eps, group_len):
    # stats_ref: (1, 2, G, 1, 1); w_ref/b_ref: (G, cpg, 1); x/o: (1, G, cpg, TH)
    s = stats_ref[0, 0]                                         # (G, 1, 1)
    sq = stats_ref[0, 1]                                        # (G, 1, 1)
    lf = jnp.float32(group_len)
    mean = s / lf
    var = (sq - lf * mean * mean) / jnp.float32(group_len - 1)
    inv = pl.reciprocal(jnp.sqrt(jnp.maximum(var, 0.0)) + jnp.float32(eps))
    w = w_ref[...].astype(jnp.float32)                          # (G, cpg, 1)
    b = b_ref[...].astype(jnp.float32)                          # (G, cpg, 1)
    scale = w * inv                                             # (G, cpg, 1)
    shift = b - mean * scale                                    # (G, cpg, 1)
    x = x_ref[0].astype(jnp.float32)                            # (G, cpg, TH)
    o_ref[0] = (x * scale + shift).astype(o_ref.dtype)


# ---------------------------------------------------------------------------
# Wrapper
# ---------------------------------------------------------------------------

def _largest_divisor_leq(n, cap):
    best = 1
    for d in range(1, n + 1):
        if n % d == 0 and d <= cap:
            best = d
    return best


def _choose_hw_tile(hw, c, max_block_bytes):
    # Lane-dense tile: multiple of 128 that divides H*W and fits the budget.
    best = None
    t = 128
    while t <= hw:
        if hw % t == 0 and c * t * 4 <= max_block_bytes:
            best = t
        t += 128
    return best


def group_batchnorm2d(x, weight, bias, group_num: int, eps: float = 1e-10,
                      *, max_block_bytes: int = 2 * 1024 * 1024):
    """x: (N, C, H, W) NCHW; weight/bias: (C, 1, 1). Returns (N, C, H, W)."""
    N, C, H, W = x.shape
    G = group_num
    assert C >= G
    # TODO(synk): the folded per-channel affine assumes channels split evenly
    # across groups (C % G == 0), which is how ScConv uses this module.
    assert C % G == 0, "kernel assumes group_num divides the channel count"
    cpg = C // G
    HW = H * W
    L = cpg * HW
    itemsize = jnp.dtype(x.dtype).itemsize

    # Grouped view of x (pure metadata reshape) and compact per-channel affine
    # params in the same (G, cpg) layout -- no HBM-sized broadcast arrays.
    x_g = x.reshape(N, G, cpg, HW)
    w_g = weight.reshape(G, cpg, 1)
    b_g = bias.reshape(G, cpg, 1)

    per_n_f32_bytes = G * L * 4  # f32 working copy of one image inside kernel
    hw_tile = None
    if per_n_f32_bytes > max_block_bytes:
        hw_tile = _choose_hw_tile(HW, C, max_block_bytes)
    # If no lane-dense tiling exists, fall back to the fused (full-block) path.

    if hw_tile is None:
        # -------- fused single-call path: whole group reduction per block ----
        bn = _largest_divisor_leq(N, max(1, max_block_bytes // per_n_f32_bytes))
        kernel = functools.partial(_gbn_fused_kernel, eps=eps, group_len=L)
        cost = pl.CostEstimate(
            flops=6 * N * C * HW,
            transcendentals=N * G,
            bytes_accessed=2 * N * C * HW * itemsize + 2 * C * itemsize,
        )
        out_g = pl.pallas_call(
            kernel,
            out_shape=jax.ShapeDtypeStruct((N, G, cpg, HW), x.dtype),
            grid_spec=pltpu.PrefetchScalarGridSpec(
                num_scalar_prefetch=0,
                grid=(N // bn,),
                in_specs=[
                    pl.BlockSpec((bn, G, cpg, HW), lambda n: (n, 0, 0, 0)),
                    pl.BlockSpec((G, cpg, 1), lambda n: (0, 0, 0)),
                    pl.BlockSpec((G, cpg, 1), lambda n: (0, 0, 0)),
                ],
                out_specs=pl.BlockSpec((bn, G, cpg, HW),
                                       lambda n: (n, 0, 0, 0)),
            ),
            compiler_params=pltpu.CompilerParams(
                dimension_semantics=("parallel",)),
            cost_estimate=cost,
        )(x_g, w_g, b_g)
        return out_g.reshape(N, C, H, W)

    # -------- two-pass path for large feature maps: tile H*W ----------------
    kt = HW // hw_tile

    stats_cost = pl.CostEstimate(
        flops=3 * N * C * HW,
        transcendentals=0,
        bytes_accessed=N * C * HW * itemsize + N * 2 * G * 4,
    )
    stats = pl.pallas_call(
        _gbn_stats_kernel,
        out_shape=jax.ShapeDtypeStruct((N, 2, G, 1, 1), jnp.float32),
        grid_spec=pltpu.PrefetchScalarGridSpec(
            num_scalar_prefetch=0,
            grid=(N, kt),
            in_specs=[
                pl.BlockSpec((1, G, cpg, hw_tile), lambda n, k: (n, 0, 0, k)),
            ],
            out_specs=pl.BlockSpec((1, 2, G, 1, 1),
                                   lambda n, k: (n, 0, 0, 0, 0)),
        ),
        compiler_params=pltpu.CompilerParams(
            dimension_semantics=("parallel", "arbitrary")),
        cost_estimate=stats_cost,
    )(x_g)

    norm_kernel = functools.partial(_gbn_norm_kernel, eps=eps, group_len=L)
    norm_cost = pl.CostEstimate(
        flops=2 * N * C * HW,
        transcendentals=N * G * kt,
        bytes_accessed=2 * N * C * HW * itemsize + N * 2 * G * 4
                       + 2 * C * itemsize,
    )
    out_g = pl.pallas_call(
        norm_kernel,
        out_shape=jax.ShapeDtypeStruct((N, G, cpg, HW), x.dtype),
        grid_spec=pltpu.PrefetchScalarGridSpec(
            num_scalar_prefetch=0,
            grid=(N, kt),
            in_specs=[
                pl.BlockSpec((1, 2, G, 1, 1), lambda n, k: (n, 0, 0, 0, 0)),
                pl.BlockSpec((G, cpg, 1), lambda n, k: (0, 0, 0)),
                pl.BlockSpec((G, cpg, 1), lambda n, k: (0, 0, 0)),
                pl.BlockSpec((1, G, cpg, hw_tile), lambda n, k: (n, 0, 0, k)),
            ],
            out_specs=pl.BlockSpec((1, G, cpg, hw_tile),
                                   lambda n, k: (n, 0, 0, k)),
        ),
        compiler_params=pltpu.CompilerParams(
            dimension_semantics=("parallel", "parallel")),
        cost_estimate=norm_cost,
    )(stats, w_g, b_g, x_g)
    return out_g.reshape(N, C, H, W)


# ---------------------------------------------------------------------------
# Reference + test
# ---------------------------------------------------------------------------

def _reference(x, weight, bias, group_num, eps=1e-10):
    # Pure-JAX reference mirroring the PyTorch forward (unbiased std).
    N, C, H, W = x.shape
    xg = x.reshape(N, group_num, -1).astype(jnp.float32)
    mean = jnp.mean(xg, axis=2, keepdims=True)
    var = jnp.sum((xg - mean) ** 2, axis=2, keepdims=True) / (xg.shape[2] - 1)
    std = jnp.sqrt(var)
    xn = ((xg - mean) / (std + eps)).reshape(N, C, H, W)
    return xn * weight.reshape(1, C, 1, 1) + bias.reshape(1, C, 1, 1)


if __name__ == "__main__":
    # Small shapes consistent with the module (c_num >= group_num).
    N, C, H, W = 2, 16, 16, 16
    group_num = 4
    eps = 1e-10

    key = jax.random.PRNGKey(0)
    kx, kw = jax.random.split(key)
    x = jax.random.normal(kx, (N, C, H, W), dtype=jnp.float32)
    # nn.Parameter(torch.randn(c,1,1)) / zeros analogue, deterministic.
    weight = jax.random.normal(kw, (C, 1, 1), dtype=jnp.float32)
    bias = jnp.zeros((C, 1, 1), dtype=jnp.float32)

    ref = _reference(x, weight, bias, group_num, eps)

    # Default (fused single-pass) path.
    out = jax.block_until_ready(
        group_batchnorm2d(x, weight, bias, group_num, eps))
    assert out.shape == (N, C, H, W)
    assert jnp.allclose(out, ref, atol=2e-4, rtol=2e-4), "fused path mismatch"

    # Force the tiled two-pass path (the one used for large feature maps) on
    # the same small input to validate it as well.
    out2 = jax.block_until_ready(
        group_batchnorm2d(x, weight, bias, group_num, eps,
                          max_block_bytes=8 * 1024))
    assert jnp.allclose(out2, ref, atol=2e-4, rtol=2e-4), "tiled path mismatch"

    print("KERNEL_OK")
</pallas_src>

<mosaic_0001>
module attributes {stable_mosaic.version = 11 : i64} {
  func.func @_gbn_fused_kernel(%arg0: i32, %arg1: memref<2x4x4x256xf32, #tpu.memory_space<vmem>>, %arg2: memref<4x4x1xf32, #tpu.memory_space<vmem>>, %arg3: memref<4x4x1xf32, #tpu.memory_space<vmem>>, %arg4: memref<2x4x4x256xf32, #tpu.memory_space<vmem>>) attributes {dimension_semantics = [#tpu.dimension_semantics<parallel>], iteration_bounds = array<i64: 1>, scalar_prefetch = 0 : i64, scratch_operands = 0 : i64, tpu.core_type = #tpu.core_type<tc>, window_params = [{transform_indices = @transform_0, window_bounds = array<i64: 2, 4, 4, 256>}, {pipeline_mode = #tpu.pipeline_mode<synchronous>, transform_indices = @transform_1, window_bounds = array<i64: 4, 4, 1>}, {pipeline_mode = #tpu.pipeline_mode<synchronous>, transform_indices = @transform_2, window_bounds = array<i64: 4, 4, 1>}, {transform_indices = @transform_3, window_bounds = array<i64: 2, 4, 4, 256>}]} {
    %c0 = arith.constant 0 : index
    %c0_0 = arith.constant 0 : index
    %c0_1 = arith.constant 0 : index
    %c0_2 = arith.constant 0 : index
    %0 = vector.load %arg1[%c0, %c0_0, %c0_1, %c0_2] : memref<2x4x4x256xf32, #tpu.memory_space<vmem>>, vector<2x4x4x256xf32>
    %cst = arith.constant dense<0.000000e+00> : vector<2x4x4xf32>
    %1 = vector.multi_reduction <add>, %0, %cst [3] : vector<2x4x4x256xf32> to vector<2x4x4xf32>
    %2 = vector.shape_cast %1 : vector<2x4x4xf32> to vector<2x4x4x1xf32>
    %cst_3 = arith.constant dense<0.000000e+00> : vector<2x4x1xf32>
    %3 = vector.multi_reduction <add>, %2, %cst_3 [2] : vector<2x4x4x1xf32> to vector<2x4x1xf32>
    %4 = vector.shape_cast %3 : vector<2x4x1xf32> to vector<2x4x1x1xf32>
    %5 = arith.mulf %0, %0 : vector<2x4x4x256xf32>
    %cst_4 = arith.constant dense<0.000000e+00> : vector<2x4x4xf32>
    %6 = vector.multi_reduction <add>, %5, %cst_4 [3] : vector<2x4x4x256xf32> to vector<2x4x4xf32>
    %7 = vector.shape_cast %6 : vector<2x4x4xf32> to vector<2x4x4x1xf32>
    %cst_5 = arith.constant dense<0.000000e+00> : vector<2x4x1xf32>
    %8 = vector.multi_reduction <add>, %7, %cst_5 [2] : vector<2x4x4x1xf32> to vector<2x4x1xf32>
    %9 = vector.shape_cast %8 : vector<2x4x1xf32> to vector<2x4x1x1xf32>
    %cst_6 = arith.constant 1.024000e+03 : f32
    %10 = vector.broadcast %cst_6 : f32 to vector<2x4x1x1xf32>
    %11 = arith.divf %4, %10 : vector<2x4x1x1xf32>
    %cst_7 = arith.constant 1.024000e+03 : f32
    %12 = vector.broadcast %cst_7 : f32 to vector<2x4x1x1xf32>
    %13 = arith.mulf %12, %11 : vector<2x4x1x1xf32>
    %14 = arith.mulf %13, %11 : vector<2x4x1x1xf32>
    %15 = arith.subf %9, %14 : vector<2x4x1x1xf32>
    %cst_8 = arith.constant 1.023000e+03 : f32
    %16 = vector.broadcast %cst_8 : f32 to vector<2x4x1x1xf32>
    %17 = arith.divf %15, %16 : vector<2x4x1x1xf32>
    %cst_9 = arith.constant 0.000000e+00 : f32
    %18 = vector.broadcast %cst_9 : f32 to vector<2x4x1x1xf32>
    %19 = arith.maximumf %17, %18 : vector<2x4x1x1xf32>
    %20 = math.sqrt %19 : vector<2x4x1x1xf32>
    %cst_10 = arith.constant 1.000000e-10 : f32
    %21 = vector.broadcast %cst_10 : f32 to vector<2x4x1x1xf32>
    %22 = arith.addf %20, %21 : vector<2x4x1x1xf32>
    %23 = tpu.reciprocal %22 : vector<2x4x1x1xf32> -> vector<2x4x1x1xf32>
    %c0_11 = arith.constant 0 : index
    %c0_12 = arith.constant 0 : index
    %c0_13 = arith.constant 0 : index
    %24 = vector.load %arg2[%c0_11, %c0_12, %c0_13] : memref<4x4x1xf32, #tpu.memory_space<vmem>>, vector<4x4x1xf32>
    %25 = vector.shape_cast %24 : vector<4x4x1xf32> to vector<1x4x4x1xf32>
    %c0_14 = arith.constant 0 : index
    %c0_15 = arith.constant 0 : index
    %c0_16 = arith.constant 0 : index
    %26 = vector.load %arg3[%c0_14, %c0_15, %c0_16] : memref<4x4x1xf32, #tpu.memory_space<vmem>>, vector<4x4x1xf32>
    %27 = vector.shape_cast %26 : vector<4x4x1xf32> to vector<1x4x4x1xf32>
    %28 = vector.broadcast %25 : vector<1x4x4x1xf32> to vector<2x4x4x1xf32>
    %29 = vector.broadcast %23 : vector<2x4x1x1xf32> to vector<2x4x4x1xf32>
    %30 = arith.mulf %28, %29 : vector<2x4x4x1xf32>
    %31 = vector.broadcast %11 : vector<2x4x1x1xf32> to vector<2x4x4x1xf32>
    %32 = arith.mulf %31, %30 : vector<2x4x4x1xf32>
    %33 = vector.broadcast %27 : vector<1x4x4x1xf32> to vector<2x4x4x1xf32>
    %34 = arith.subf %33, %32 : vector<2x4x4x1xf32>
    %35 = vector.broadcast %30 : vector<2x4x4x1xf32> to vector<2x4x4x256xf32>
    %36 = arith.mulf %0, %35 : vector<2x4x4x256xf32>
    %37 = vector.broadcast %34 : vector<2x4x4x1xf32> to vector<2x4x4x256xf32>
    %38 = arith.addf %36, %37 : vector<2x4x4x256xf32>
    %c0_17 = arith.constant 0 : index
    %c0_18 = arith.constant 0 : index
    %c0_19 = arith.constant 0 : index
    %c0_20 = arith.constant 0 : index
    %39 = vector.load %arg4[%c0_17, %c0_18, %c0_19, %c0_20] : memref<2x4x4x256xf32, #tpu.memory_space<vmem>>, vector<2x4x4x256xf32>
    tpu.vector_store %arg4[%c0_17, %c0_18, %c0_19, %c0_20], %38 {strides = array<i32>} : memref<2x4x4x256xf32, #tpu.memory_space<vmem>>, vector<2x4x4x256xf32>,
    return
  }
  func.func @transform_0(%arg0: i32) -> (i32, i32, i32, i32) {
    %c0_i32 = arith.constant 0 : i32
    %c0_i32_0 = arith.constant 0 : i32
    %c0_i32_1 = arith.constant 0 : i32
    %c0_i32_2 = arith.constant 0 : i32
    return %arg0, %c0_i32, %c0_i32_0, %c0_i32_1 : i32, i32, i32, i32
  }
  func.func @transform_1(%arg0: i32) -> (i32, i32, i32) {
    %c0_i32 = arith.constant 0 : i32
    %c0_i32_0 = arith.constant 0 : i32
    %c0_i32_1 = arith.constant 0 : i32
    %c0_i32_2 = arith.constant 0 : i32
    return %c0_i32, %c0_i32_0, %c0_i32_1 : i32, i32, i32
  }
  func.func @transform_2(%arg0: i32) -> (i32, i32, i32) {
    %c0_i32 = arith.constant 0 : i32
    %c0_i32_0 = arith.constant 0 : i32
    %c0_i32_1 = arith.constant 0 : i32
    %c0_i32_2 = arith.constant 0 : i32
    return %c0_i32, %c0_i32_0, %c0_i32_1 : i32, i32, i32
  }
  func.func @transform_3(%arg0: i32) -> (i32, i32, i32, i32) {
    %c0_i32 = arith.constant 0 : i32
    %c0_i32_0 = arith.constant 0 : i32
    %c0_i32_1 = arith.constant 0 : i32
    %c0_i32_2 = arith.constant 0 : i32
    return %arg0, %c0_i32, %c0_i32_0, %c0_i32_1 : i32, i32, i32, i32
  }
}

</mosaic_0001>

<bundles_post_ra>
// kernel: tpu_custom_call.1
= control target key start
LH: loop header
LB: loop body
LE: loop exit
PB: predicated region body
PF: predicated region fallthrough
CT: control target
= control target key end

     0   :  { %8 = vsyncpa [#allocation3], 0  ;;  %s1025_s0 = inlined_call_operand.hbm [shape: f32[2,4,4,256], index: 0, kind: input, shape index: {}]   ;;  %s1026_s1 = inlined_call_operand.vmem [shape: f32[4,4,1], index: 1, kind: input, shape index: {}]   ;;  %s1027_s2 = inlined_call_operand.vmem [shape: f32[4,4,1], index: 2, kind: input, shape index: {}]   ;;  %s1028_s3 = inlined_call_operand.hbm [shape: f32[2,4,4,256], index: 3, kind: output, shape index: {}]  }
   0x1   :  { %9 = vsyncpa [#allocation4], 0  ;;  %s769_s12 = smov [#allocation2]   ;;  %s721_s16 = scalar_lea.hbm %s1025_s0, 1024 }
   0x2   :  { %s15_s13 = sshll.u32 %s769_s12, 4  ;;  %p722_p0 = scmp.ne.s32.totalorder %s1025_s0, %s721_s16  ;;  %s16_s13 = int_to_ptr.vmem [resolvable:$true] %s15_s13 }
   0x3   :  { %p725_p1 = scmp.lt.u32.totalorder %s721_s16, %s1025_s0 }
   0x5   :  { %p727_p2 = pnand %p725_p1, %p722_p0 }
   0x7   :  { %730 = shalt.err (!%p727_p2)
}
   0x8   :  { %s731_s21 = scalar_lea.vmem %s16_s13, 1024  ;;  %p736_p4 = scmp.lt.s32.totalorder %s16_s13, %s16_s13 }
   0x9   :  { %p732_p3 = scmp.ne.s32.totalorder %s16_s13, %s731_s21  ;;  %p737_p5 = scmp.lt.s32.totalorder %s731_s21, %s731_s21 }
   0xb   :  { %p738_p6 = por %p737_p5, %p736_p4 }
   0xd   :  { %p739_p7 = pnand %p738_p6, %p732_p3 }
   0xf   :  { %742 = shalt.err (!%p739_p7)
}
  0x10   :  { %s770_s22 = smov 128   ;;  %s771_s23 = smov 8  }
  0x11   :  { %21 = dma.hbm_to_vmem [thread:$0]  %s1025_s0, 1024, %s16_s13, [#allocation3], %s770_s22, %s770_s22, %s771_s23  }
  0x12   :  { %765 = dma.done.wait [#allocation3], 1024  }
  0x13   :  { %766 = vsyncadd [#allocation3], 4294966272  ;;  %vm61_vm0 = vcmask 1043456   ;;  %v810_v0 = vld [vmem:[#allocation2 + $0x10] sm:$0xff]  ;;  %v812_v1 = vld [vmem:[#allocation2] sm:$0xff] }
  0x14   :  { %v814_v2 = vld [vmem:[#allocation2 + $0x18] sm:$0xff]  ;;  %v47_v3 = vcombine.high %v810_v0, %v810_v0  ;;  %v72_v4 = vsel %vm61_vm0, %v810_v0, 0.0  ;;  %v45_v5 = vcombine.high %v812_v1, %v812_v1  ;;  %v62_v6 = vsel %vm61_vm0, %v812_v1, 0.0  ;;  %v824_v7 = vld [vmem:[#allocation2 + $0x8] sm:$0xff]  ;;  %v834_v12 = vld [vmem:[#allocation2 + $0x20] sm:$0xff] }
  0x15   :  { %v826_v8 = vld [vmem:[#allocation2 + $0x28] sm:$0xff]  ;;  %v48_v9 = vcombine.high %v814_v2, %v814_v2  ;;  %v77_v10 = vsel %vm61_vm0, %v814_v2, 0.0  ;;  %v46_v11 = vcombine.high %v824_v7, %v824_v7  ;;  %v67_v15 = vsel %vm61_vm0, %v824_v7, 0.0  ;;  %v842_v17 = vld [vmem:[#allocation2 + $0x38] sm:$0xff]  ;;  %v846_v22 = vld [vmem:[#allocation2 + $0x30] sm:$0xff] }
  0x16   :  { %v73_v13 = vsel %vm61_vm0, %v47_v3, 0.0  ;;  %v63_v14 = vsel %vm61_vm0, %v45_v5, 0.0  ;;  %v50_v16 = vcombine.high %v826_v8, %v826_v8  ;;  %v87_v23 = vsel %vm61_vm0, %v826_v8, 0.0 }
  0x17   :  { %v74_v18 = vadd.f32 %v73_v13, %v72_v4  ;;  %v64_v19 = vadd.f32 %v63_v14, %v62_v6  ;;  %v78_v20 = vsel %vm61_vm0, %v48_v9, 0.0  ;;  %v68_v21 = vsel %vm61_vm0, %v46_v11, 0.0 }
  0x18   :  { %v49_v24 = vcombine.high %v834_v12, %v834_v12  ;;  %v79_v25 = vadd.f32 %v78_v20, %v77_v10  ;;  %v69_v26 = vadd.f32 %v68_v21, %v67_v15  ;;  %v88_v27 = vsel %vm61_vm0, %v50_v16, 0.0 }
  0x19   :  { %75 = vadd.xlane.f32.xlu1 %v74_v18  ;;  %65 = vadd.xlane.f32.xlu0 %v64_v19  ;;  %v52_v28 = vcombine.high %v842_v17, %v842_v17  ;;  %v82_v29 = vsel %vm61_vm0, %v834_v12, 0.0  ;;  %v51_v31 = vcombine.high %v846_v22, %v846_v22  ;;  %v159_v32 = vmul.f32 %v824_v7, %v824_v7 }
  0x1a   :  { %v83_v30 = vsel %vm61_vm0, %v49_v24, 0.0  ;;  %v158_v33 = vmul.f32 %v812_v1, %v812_v1  ;;  %v89_v34 = vadd.f32 %v88_v27, %v87_v23  ;;  %v97_v35 = vsel %vm61_vm0, %v842_v17, 0.0 }
  0x1b   :  { %v84_v36 = vadd.f32 %v83_v30, %v82_v29  ;;  %v98_v37 = vsel %vm61_vm0, %v52_v28, 0.0  ;;  %v175_v38 = vcombine.high %v159_v32, %v159_v32  ;;  %v161_v39 = vmul.f32 %v814_v2, %v814_v2 }
  0x1c   :  { %v92_v40 = vsel %vm61_vm0, %v846_v22, 0.0  ;;  %v93_v41 = vsel %vm61_vm0, %v51_v31, 0.0  ;;  %v174_v42 = vcombine.high %v158_v33, %v158_v33  ;;  %v160_v43 = vmul.f32 %v810_v0, %v810_v0 }
  0x1d   :  { %80 = vadd.xlane.f32.xlu1 %v79_v25  ;;  %70 = vadd.xlane.f32.xlu0 %v69_v26  ;;  %v99_v44 = vadd.f32 %v98_v37, %v97_v35  ;;  %v195_v45 = vsel %vm61_vm0, %v159_v32, 0.0  ;;  %v94_v46 = vadd.f32 %v93_v41, %v92_v40  ;;  %v196_v47 = vsel %vm61_vm0, %v175_v38, 0.0 }
  0x1e   :  { %v177_v48 = vcombine.high %v161_v39, %v161_v39  ;;  %v163_v49 = vmul.f32 %v826_v8, %v826_v8  ;;  %v190_v50 = vsel %vm61_vm0, %v158_v33, 0.0  ;;  %v191_v51 = vsel %vm61_vm0, %v174_v42, 0.0 }
  0x1f   :  { %v176_v52 = vcombine.high %v160_v43, %v160_v43  ;;  %v162_v53 = vmul.f32 %v834_v12, %v834_v12  ;;  %v197_v54 = vadd.f32 %v196_v47, %v195_v45  ;;  %v205_v55 = vsel %vm61_vm0, %v161_v39, 0.0 }
  0x20   :  { %v192_v56 = vadd.f32 %v191_v51, %v190_v50  ;;  %v206_v57 = vsel %vm61_vm0, %v177_v48, 0.0  ;;  %v200_v58 = vsel %vm61_vm0, %v160_v43, 0.0  ;;  %v179_v59 = vcombine.high %v163_v49, %v163_v49 }
  0x21   :  { %90 = vadd.xlane.f32.xlu1 %v89_v34  ;;  %85 = vadd.xlane.f32.xlu0 %v84_v36  ;;  %v201_v60 = vsel %vm61_vm0, %v176_v52, 0.0  ;;  %v178_v61 = vcombine.high %v162_v53, %v162_v53  ;;  %v165_v62 = vmul.f32 %v842_v17, %v842_v17  ;;  %v164_v63 = vmul.f32 %v846_v22, %v846_v22 }
  0x22   :  { %v207_v3 = vadd.f32 %v206_v57, %v205_v55  ;;  %v202_v4 = vadd.f32 %v201_v60, %v200_v58  ;;  %v215_v5 = vsel %vm61_vm0, %v163_v49, 0.0  ;;  %v210_v6 = vsel %vm61_vm0, %v162_v53, 0.0 }
  0x23   :  { %v216_v9 = vsel %vm61_vm0, %v179_v59, 0.0  ;;  %v211_v10 = vsel %vm61_vm0, %v178_v61, 0.0  ;;  %v181_v11 = vcombine.high %v165_v62, %v165_v62  ;;  %v180_v13 = vcombine.high %v164_v63, %v164_v63 }
  0x24   :  { %v217_v14 = vadd.f32 %v216_v9, %v215_v5  ;;  %v212_v15 = vadd.f32 %v211_v10, %v210_v6  ;;  %v225_v16 = vsel %vm61_vm0, %v165_v62, 0.0  ;;  %v220_v19 = vsel %vm61_vm0, %v164_v63, 0.0 }
  0x25   :  { %100 = vadd.xlane.f32.xlu1 %v99_v44  ;;  %95 = vadd.xlane.f32.xlu0 %v94_v46  ;;  %v226_v18 = vsel %vm61_vm0, %v181_v11, 0.0  ;;  %v221_v20 = vsel %vm61_vm0, %v180_v13, 0.0  ;;  %v772_v24 = vmov 0  }
  0x26   :  { %v227_v21 = vadd.f32 %v226_v18, %v225_v16  ;;  %v222_v23 = vadd.f32 %v221_v20, %v220_v19  ;;  %680 = vset.pattern.permute.xlu1 %v772_v24  ;;  %679 = vset.pattern.permute.xlu0 %v772_v24 }
  0x29   :  { %198 = vadd.xlane.f32.xlu1 %v197_v54  ;;  %193 = vadd.xlane.f32.xlu0 %v192_v56 }
  0x2d   :  { %208 = vadd.xlane.f32.xlu1 %v207_v3  ;;  %203 = vadd.xlane.f32.xlu0 %v202_v4 }
  0x31   :  { %218 = vadd.xlane.f32.xlu1 %v217_v14  ;;  %213 = vadd.xlane.f32.xlu0 %v212_v15 }
  0x35   :  { %228 = vadd.xlane.f32.xlu1 %v227_v21  ;;  %223 = vadd.xlane.f32.xlu0 %v222_v23 }
  0xa6   :  { %v76_v25 = vpop.xlane.xlu1 %75  ;;  %v66_v26 = vpop.xlane.xlu0 %65 }
  0xa7   :  { %v116_v27 = vsel %vm61_vm0, %v76_v25, 0.0  ;;  %v102_v28 = vsel %vm61_vm0, %v66_v26, 0.0 }
  0xa8   :  { %v117_v29 = vrot.slane %v116_v27, 4  ;;  %v103_v30 = vrot.slane %v102_v28, 4 }
  0xaa   :  { %v118_v31 = vadd.f32 %v117_v29, %v116_v27  ;;  %v104_v32 = vadd.f32 %v103_v30, %v102_v28  ;;  %v81_v33 = vpop.xlane.xlu1 %80  ;;  %v71_v34 = vpop.xlane.xlu0 %70 }
  0xab   :  { %v123_v35 = vsel %vm61_vm0, %v81_v33, 0.0  ;;  %v109_v36 = vsel %vm61_vm0, %v71_v34, 0.0 }
  0xac   :  { %v119_v37 = vrot.slane %v118_v31, 2  ;;  %v105_v38 = vrot.slane %v104_v32, 2  ;;  %v124_v39 = vrot.slane %v123_v35, 4  ;;  %v110_v40 = vrot.slane %v109_v36, 4 }
  0xae   :  { %v120_v41 = vadd.f32 %v119_v37, %v118_v31  ;;  %v106_v42 = vadd.f32 %v105_v38, %v104_v32  ;;  %v125_v43 = vadd.f32 %v124_v39, %v123_v35  ;;  %v111_v44 = vadd.f32 %v110_v40, %v109_v36  ;;  %v91_v45 = vpop.xlane.xlu1 %90  ;;  %v86_v46 = vpop.xlane.xlu0 %85 }
  0xaf   :  { %v137_v47 = vsel %vm61_vm0, %v91_v45, 0.0  ;;  %v130_v48 = vsel %vm61_vm0, %v86_v46, 0.0 }
  0xb0   :  { %v121_v49 = vrot.slane %v120_v41, 1  ;;  %v107_v50 = vrot.slane %v106_v42, 1  ;;  %v126_v51 = vrot.slane %v125_v43, 2  ;;  %v112_v52 = vrot.slane %v111_v44, 2 }
  0xb1   :  { %v138_v53 = vrot.slane %v137_v47, 4  ;;  %v131_v54 = vrot.slane %v130_v48, 4 }
  0xb2   :  { %v108_v55 = vadd.f32 %v107_v50, %v106_v42  ;;  %v127_v56 = vadd.f32 %v126_v51, %v125_v43  ;;  %v113_v57 = vadd.f32 %v112_v52, %v111_v44  ;;  %v101_v58 = vpop.xlane.xlu1 %100  ;;  %v96_v59 = vpop.xlane.xlu0 %95  ;;  %v122_v3 = vadd.f32 %v121_v49, %v120_v41 }
  0xb3   :  { %v139_v60 = vadd.f32 %v138_v53, %v137_v47  ;;  %v132_v61 = vadd.f32 %v131_v54, %v130_v48  ;;  %v151_v62 = vsel %vm61_vm0, %v101_v58, 0.0  ;;  %v144_v63 = vsel %vm61_vm0, %v96_v59, 0.0 }
  0xb4   :  { %v128_v4 = vrot.slane %v127_v56, 1  ;;  %v114_v5 = vrot.slane %v113_v57, 1  ;;  %v152_v10 = vrot.slane %v151_v62, 4  ;;  %v145_v11 = vrot.slane %v144_v63, 4 }
  0xb5   :  { %v140_v6 = vrot.slane %v139_v60, 2  ;;  %v133_v9 = vrot.slane %v132_v61, 2  ;;  %v906_v13 = vmul.f32 0.0009765625, %v108_v55  ;;  %v908_v24 = vmul.f32 0.0009765625, %v122_v3 }
  0xb6   :  { %v129_v14 = vadd.f32 %v128_v4, %v127_v56  ;;  %v115_v15 = vadd.f32 %v114_v5, %v113_v57  ;;  %v199_v16 = vpop.xlane.xlu1 %198  ;;  %v194_v18 = vpop.xlane.xlu0 %193  ;;  %v153_v21 = vadd.f32 %v152_v10, %v151_v62  ;;  %v146_v23 = vadd.f32 %v145_v11, %v144_v63 }
  0xb7   :  { %v141_v19 = vadd.f32 %v140_v6, %v139_v60  ;;  %v134_v20 = vadd.f32 %v133_v9, %v132_v61  ;;  %v237_v27 = vsel %vm61_vm0, %v199_v16, 0.0  ;;  %v295_v32 = vmul.f32 1024.0, %v906_v13 }
  0xb8   :  { %v910_v25 = vmul.f32 0.0009765625, %v129_v14  ;;  %v912_v26 = vmul.f32 0.0009765625, %v115_v15  ;;  %v154_v30 = vrot.slane %v153_v21, 2  ;;  %v147_v31 = vrot.slane %v146_v23, 2 }
  0xb9   :  { %v142_v28 = vrot.slane %v141_v19, 1  ;;  %v135_v29 = vrot.slane %v134_v20, 1  ;;  %v238_v34 = vrot.slane %v237_v27, 4  ;;  %v230_v35 = vsel %vm61_vm0, %v194_v18, 0.0 }
  0xba   :  { %v296_v33 = vmul.f32 1024.0, %v912_v26  ;;  %v209_v36 = vpop.xlane.xlu1 %208  ;;  %v204_v37 = vpop.xlane.xlu0 %203  ;;  %v155_v40 = vadd.f32 %v154_v30, %v153_v21  ;;  %v148_v41 = vadd.f32 %v147_v31, %v146_v23  ;;  %v231_v43 = vrot.slane %v230_v35, 4 }
  0xbb   :  { %v143_v38 = vadd.f32 %v142_v28, %v141_v19  ;;  %v136_v39 = vadd.f32 %v135_v29, %v134_v20  ;;  %v239_v42 = vadd.f32 %v238_v34, %v237_v27  ;;  %v297_v44 = vmul.f32 1024.0, %v908_v24 }
  0xbc   :  { %v298_v45 = vmul.f32 1024.0, %v910_v25  ;;  %v156_v46 = vrot.slane %v155_v40, 1  ;;  %v149_v47 = vrot.slane %v148_v41, 1  ;;  %v303_v49 = vmul.f32 %v295_v32, %v906_v13 }
  0xbd   :  { %v240_v48 = vrot.slane %v239_v42, 2  ;;  %v232_v50 = vadd.f32 %v231_v43, %v230_v35  ;;  %v251_v51 = vsel %vm61_vm0, %v209_v36, 0.0  ;;  %v922_v53 = vmul.f32 0.0009765625, %v143_v38 }
  0xbe   :  { %v219_v52 = vpop.xlane.xlu1 %218  ;;  %v924_v54 = vmul.f32 0.0009765625, %v136_v39  ;;  %v157_v55 = vadd.f32 %v156_v46, %v155_v40  ;;  %v304_v56 = vmul.f32 %v296_v33, %v912_v26  ;;  %v252_v59 = vrot.slane %v251_v51, 4  ;;  %v214_v61 = vpop.xlane.xlu0 %213 }
  0xbf   :  { %v241_v57 = vadd.f32 %v240_v48, %v239_v42  ;;  %v233_v58 = vrot.slane %v232_v50, 2  ;;  %v244_v60 = vsel %vm61_vm0, %v204_v37, 0.0  ;;  %v150_v62 = vadd.f32 %v149_v47, %v148_v41 }
  0xc0   :  { %v306_v63 = vmul.f32 %v298_v45, %v910_v25  ;;  %v305_v3 = vmul.f32 %v297_v44, %v908_v24  ;;  %v245_v4 = vrot.slane %v244_v60, 4  ;;  %v253_v9 = vadd.f32 %v252_v59, %v251_v51 }
  0xc1   :  { %v242_v5 = vrot.slane %v241_v57, 1  ;;  %v234_v6 = vadd.f32 %v233_v58, %v232_v50  ;;  %v265_v10 = vsel %vm61_vm0, %v219_v52, 0.0  ;;  %v300_v11 = vmul.f32 1024.0, %v922_v53 }
  0xc2   :  { %v299_v14 = vmul.f32 1024.0, %v924_v54  ;;  %v246_v15 = vadd.f32 %v245_v4, %v244_v60  ;;  %v266_v16 = vrot.slane %v265_v10, 4  ;;  %v933_v18 = vmul.f32 0.0009765625, %v157_v55  ;;  %v229_v23 = vpop.xlane.xlu1 %228  ;;  %v224_v35 = vpop.xlane.xlu0 %223 }
  0xc3   :  { %v243_v19 = vadd.f32 %v242_v5, %v241_v57  ;;  %v235_v20 = vrot.slane %v234_v6, 1  ;;  %v254_v21 = vrot.slane %v253_v9, 2  ;;  %v935_v27 = vmul.f32 0.0009765625, %v150_v62 }
  0xc4   :  { %v247_v28 = vrot.slane %v246_v15, 2  ;;  %v267_v29 = vadd.f32 %v266_v16, %v265_v10  ;;  %v258_v30 = vsel %vm61_vm0, %v214_v61, 0.0  ;;  %v308_v37 = vmul.f32 %v300_v11, %v922_v53 }
  0xc5   :  { %v312_v31 = vsub.f32 %v243_v19, %v304_v56  ;;  %v236_v32 = vadd.f32 %v235_v20, %v234_v6  ;;  %v255_v33 = vadd.f32 %v254_v21, %v253_v9  ;;  %v259_v34 = vrot.slane %v258_v30, 4 }
  0xc6   :  { %v248_v36 = vadd.f32 %v247_v28, %v246_v15  ;;  %v268_v38 = vrot.slane %v267_v29, 2  ;;  %v279_v39 = vsel %vm61_vm0, %v229_v23, 0.0  ;;  %v272_v47 = vsel %vm61_vm0, %v224_v35, 0.0 }
  0xc7   :  { %v321_v40 = vmul.f32 0.0009775171, %v312_v31  ;;  %v311_v41 = vsub.f32 %v236_v32, %v303_v49  ;;  %v256_v42 = vrot.slane %v255_v33, 1  ;;  %v260_v43 = vadd.f32 %v259_v34, %v258_v30 }
  0xc8   :  { %v249_v44 = vrot.slane %v248_v36, 1  ;;  %v269_v45 = vadd.f32 %v268_v38, %v267_v29  ;;  %v280_v46 = vrot.slane %v279_v39, 4  ;;  %v273_v58 = vrot.slane %v272_v47, 4 }
  0xc9   :  { %v329_v48 = vmax.f32 %v321_v40, 0.0  ;;  %v320_v50 = vmul.f32 0.0009775171, %v311_v41  ;;  %v257_v51 = vadd.f32 %v256_v42, %v255_v33  ;;  %v261_v52 = vrot.slane %v260_v43, 2 }
  0xca   :  { %v250_v55 = vadd.f32 %v249_v44, %v248_v36  ;;  %v270_v56 = vrot.slane %v269_v45, 1  ;;  %v281_v57 = vadd.f32 %v280_v46, %v279_v39  ;;  %v274_v5 = vadd.f32 %v273_v58, %v272_v47 }
  0xcb   :  { %689 = vrsqrt.f32 %v329_v48  ;;  %v328_v59 = vmax.f32 %v320_v50, 0.0  ;;  %v314_v60 = vsub.f32 %v257_v51, %v306_v63  ;;  %v262_v61 = vadd.f32 %v261_v52, %v260_v43 }
  0xcc   :  { %v313_v49 = vsub.f32 %v250_v55, %v305_v3  ;;  %v271_v62 = vadd.f32 %v270_v56, %v269_v45  ;;  %v282_v4 = vrot.slane %v281_v57, 2  ;;  %v302_v6 = vmul.f32 1024.0, %v933_v18 }
  0xcd   :  { %691 = vrsqrt.f32 %v328_v59  ;;  %v323_v9 = vmul.f32 0.0009775171, %v314_v60  ;;  %v263_v10 = vrot.slane %v262_v61, 1  ;;  %v275_v19 = vrot.slane %v274_v5, 2 }
  0xce   :  { %v322_v11 = vmul.f32 0.0009775171, %v313_v49  ;;  %v316_v15 = vsub.f32 %v271_v62, %v308_v37  ;;  %v283_v16 = vadd.f32 %v282_v4, %v281_v57  ;;  %v301_v20 = vmul.f32 1024.0, %v935_v27 }
  0xcf   :  { %v331_v21 = vmax.f32 %v323_v9, 0.0  ;;  %v307_v23 = vmul.f32 %v299_v14, %v924_v54  ;;  %v264_v63 = vadd.f32 %v263_v10, %v262_v61  ;;  %v276_v30 = vadd.f32 %v275_v19, %v274_v5 }
  0xd0   :  { %v330_v28 = vmax.f32 %v322_v11, 0.0  ;;  %v325_v3 = vmul.f32 0.0009775171, %v316_v15  ;;  %v284_v29 = vrot.slane %v283_v16, 1  ;;  %v310_v32 = vmul.f32 %v302_v6, %v933_v18 }
  0xd1   :  { %693 = vrsqrt.f32 %v331_v21  ;;  %v315_v31 = vsub.f32 %v264_v63, %v307_v23  ;;  %v277_v35 = vrot.slane %v276_v30, 1  ;;  %v309_v38 = vmul.f32 %v301_v20, %v935_v27 }
  0xd2   :  { %695 = vrsqrt.f32 %v330_v28  ;;  %v333_v33 = vmax.f32 %v325_v3, 0.0  ;;  %v285_v34 = vadd.f32 %v284_v29, %v283_v16  ;;  %vm345_vm1 = vcmp.eq.f32.partialorder %v329_v48, inf }
  0xd3   :  { %v324_v36 = vmul.f32 0.0009775171, %v315_v31  ;;  %v278_v39 = vadd.f32 %v277_v35, %v276_v30  ;;  %vm347_vm2 = vcmp.eq.f32.partialorder %v329_v48, 0.0  ;;  %v348_v45 = vand.u32 2147483648, %v329_v48 }
  0xd4   :  { %697 = vrsqrt.f32 %v333_v33  ;;  %v318_v37 = vsub.f32 %v285_v34, %v310_v32  ;;  %vm338_vm3 = vcmp.eq.f32.partialorder %v328_v59, inf  ;;  %vm340_vm4 = vcmp.eq.f32.partialorder %v328_v59, 0.0 }
  0xd5   :  { %v690_v14 = vpop.eup %689  ;;  %v946_v40 = vmax.f32 %v324_v36, 0.0  ;;  %v317_v42 = vsub.f32 %v278_v39, %v309_v38  ;;  %v341_v55 = vand.u32 2147483648, %v328_v59  ;;  %vm352_vm5 = vcmp.eq.f32.partialorder %v330_v28, inf }
  0xd6   :  { %v327_v41 = vmul.f32 0.0009775171, %v318_v37  ;;  %v344_v43 = vmul.f32 %v690_v14, %v329_v48  ;;  %vm359_vm6 = vcmp.eq.f32.partialorder %v331_v21, inf  ;;  %v362_v5 = vand.u32 2147483648, %v331_v21  ;;  %v408_v37 = vld [vmem:[%s1026_s1] sm:$0xf] }
  0xd7   :  { %v692_v44 = vpop.eup %691  ;;  %699 = vrsqrt.f32 %v946_v40  ;;  %v326_v47 = vmul.f32 0.0009775171, %v317_v42  ;;  %v355_v9 = vand.u32 2147483648, %v330_v28  ;;  %vm361_vm7 = vcmp.eq.f32.partialorder %v331_v21, 0.0 }
  0xd8   :  { %v949_v46 = vmax.f32 %v327_v41, 0.0  ;;  %v346_v50 = vsel %vm345_vm1, %v329_v48, %v344_v43  ;;  %v337_v51 = vmul.f32 %v692_v44, %v328_v59  ;;  %vm354_vm8 = vcmp.eq.f32.partialorder %v330_v28, 0.0 }
  0xd9   :  { %v349_v52 = vsel %vm347_vm2, %v348_v45, %v346_v50  ;;  %v952_v56 = vmax.f32 %v326_v47, 0.0  ;;  %vm373_vm9 = vcmp.eq.f32.partialorder %v333_v33, inf  ;;  %v376_v16 = vand.u32 2147483648, %v333_v33  ;;  %v413_v50 = vld [vmem:[%s1027_s2 + $0x4] sm:$0xf] }
  0xda   :  { %701 = vrsqrt.f32 %v949_v46  ;;  %v393_v57 = vadd.f32 1e-10, %v349_v52  ;;  %v339_v58 = vsel %vm338_vm3, %v328_v59, %v337_v51  ;;  %vm375_vm10 = vcmp.eq.f32.partialorder %v333_v33, 0.0 }
  0xdb   :  { %v694_v60 = vpop.eup %693  ;;  %v342_v61 = vsel %vm340_vm4, %v341_v55, %v339_v58  ;;  %703 = vrsqrt.f32 %v952_v56  ;;  %vm366_vm11 = vcmp.eq.f32.partialorder %v946_v40, inf  ;;  %vm368_vm12 = vcmp.eq.f32.partialorder %v946_v40, 0.0  ;;  %v411_v55 = vld [vmem:[%s1026_s1 + $0xc] sm:$0xf]  ;;  %v410_v58 = vld [vmem:[%s1026_s1 + $0x8] sm:$0xf] }
  0xdc   :  { %v696_v49 = vpop.eup %695  ;;  %v392_v62 = vadd.f32 1e-10, %v342_v61  ;;  %v358_v4 = vmul.f32 %v694_v60, %v331_v21  ;;  %705 = vrcp.f32 %v393_v57  ;;  %vm387_vm13 = vcmp.eq.f32.partialorder %v949_v46, inf }
  0xdd   :  { %v351_v48 = vmul.f32 %v696_v49, %v330_v28  ;;  %v390_v39 = vand.u32 2147483648, %v949_v46  ;;  %vm389_vm14 = vcmp.eq.f32.partialorder %v949_v46, 0.0  ;;  %vm380_vm15 = vcmp.eq.f32.partialorder %v952_v56, inf }
  0xde   :  { %v698_v6 = vpop.eup %697  ;;  %707 = vrcp.f32 %v392_v62  ;;  %v360_v10 = vsel %vm359_vm6, %v331_v21, %v358_v4  ;;  %v369_v21 = vand.u32 2147483648, %v946_v40  ;;  %vm382_vm0 = vcmp.eq.f32.partialorder %v952_v56, 0.0 }
  0xdf   :  { %v372_v11 = vmul.f32 %v698_v6, %v333_v33  ;;  %v353_v15 = vsel %vm352_vm5, %v330_v28, %v351_v48  ;;  %v363_v59 = vsel %vm361_vm7, %v362_v5, %v360_v10  ;;  %v383_v45 = vand.u32 2147483648, %v952_v56 }
  0xe0   :  { %v356_v19 = vsel %vm354_vm8, %v355_v9, %v353_v15  ;;  %v395_v20 = vadd.f32 1e-10, %v363_v59 }
  0xe1   :  { %v700_v23 = vpop.eup %699  ;;  %v374_v63 = vsel %vm373_vm9, %v333_v33, %v372_v11  ;;  %v394_v3 = vadd.f32 1e-10, %v356_v19  ;;  %v409_v33 = vld [vmem:[%s1026_s1 + $0x4] sm:$0xf] }
  0xe2   :  { %v377_v29 = vsel %vm375_vm10, %v376_v16, %v374_v63  ;;  %709 = vrcp.f32 %v395_v20  ;;  %v365_v30 = vmul.f32 %v700_v23, %v946_v40 }
  0xe3   :  { %v397_v31 = vadd.f32 1e-10, %v377_v29  ;;  %711 = vrcp.f32 %v394_v3 }
  0xe4   :  { %v702_v28 = vpop.eup %701  ;;  %v367_v32 = vsel %vm366_vm11, %v946_v40, %v365_v30 }
  0xe5   :  { %713 = vrcp.f32 %v397_v31  ;;  %v370_v34 = vsel %vm368_vm12, %v369_v21, %v367_v32  ;;  %v386_v35 = vmul.f32 %v702_v28, %v949_v46  ;;  %v704_v36 = vpop.eup %703 }
  0xe6   :  { %v396_v38 = vadd.f32 1e-10, %v370_v34  ;;  %v706_v14 = vpop.eup %705  ;;  %v379_v41 = vmul.f32 %v704_v36, %v952_v56 }
  0xe7   :  { %v388_v40 = vsel %vm387_vm13, %v949_v46, %v386_v35  ;;  %v417_v43 = vmul.f32 %v706_v14, %v409_v33  ;;  %v475_v35 = vlaneseq }
  0xe8   :  { %v708_v42 = vpop.eup %707  ;;  %v391_v44 = vsel %vm389_vm14, %v390_v39, %v388_v40  ;;  %715 = vrcp.f32 %v396_v38  ;;  %v381_v46 = vsel %vm380_vm15, %v952_v56, %v379_v41 }
  0xe9   :  { %v416_v47 = vmul.f32 %v708_v42, %v408_v37  ;;  %v399_v51 = vadd.f32 1e-10, %v391_v44  ;;  %446 = vperm.xlu1 %680, %v417_v43   ;;  %v425_v52 = vmul.f32 %v417_v43, %v912_v26  ;;  %v384_v57 = vsel %vm382_vm0, %v383_v45, %v381_v46  ;;  %v415_v26 = vld [vmem:[%s1027_s2 + $0xc] sm:$0xf] }
  0xea   :  { %v398_v4 = vadd.f32 1e-10, %v384_v57 }
  0xeb   :  { %442 = vperm.xlu0 %679, %v416_v47   ;;  %717 = vrcp.f32 %v399_v51  ;;  %v433_v61 = vsub.f32 %v413_v50, %v425_v52  ;;  %v424_v3 = vmul.f32 %v416_v47, %v906_v13 }
  0xec   :  { %v710_v60 = vpop.eup %709  ;;  %719 = vrcp.f32 %v398_v4 }
  0xed   :  { %v712_v49 = vpop.eup %711  ;;  %v419_v62 = vmul.f32 %v710_v60, %v411_v55 }
  0xee   :  { %v418_v56 = vmul.f32 %v712_v49, %v410_v58 }
  0xef   :  { %v714_v48 = vpop.eup %713  ;;  %550 = vperm.xlu0 %679, %v433_v61   ;;  %v427_v5 = vmul.f32 %v419_v62, %v910_v25 }
  0xf0   :  { %v421_v6 = vmul.f32 %v714_v48, %v409_v33  ;;  %450 = vperm.xlu1 %680, %v418_v56   ;;  %v426_v30 = vmul.f32 %v418_v56, %v908_v24  ;;  %v773_v33 = vmov 839922192   ;;  %v476_v24 = vshrl.u32 %v475_v35, 7 }
  0xf1   :  { %v435_v9 = vsub.f32 %v415_v26, %v427_v5  ;;  %v473_v34 = vunpack.c.l.s4 %v773_v33 }
  0xf2   :  { %v429_v10 = vmul.f32 %v421_v6, %v922_v53  ;;  %v716_v11 = vpop.eup %715  ;;  %v412_v53 = vld [vmem:[%s1027_s2] sm:$0xf] }
  0xf3   :  { %558 = vperm.xlu0 %679, %v435_v9   ;;  %v420_v16 = vmul.f32 %v716_v11, %v408_v37  ;;  %v432_v29 = vsub.f32 %v412_v53, %v424_v3  ;;  %v474_v36 = vunpack.c.0.s8 %v473_v34 }
  0xf4   :  { %454 = vperm.xlu1 %680, %v419_v62   ;;  %v437_v15 = vsub.f32 %v413_v50, %v429_v10 }
  0xf5   :  { %v718_v59 = vpop.eup %717  ;;  %v428_v21 = vmul.f32 %v420_v16, %v924_v54  ;;  %v477_v37 = vsub.s32 %v474_v36, %v476_v24 }
  0xf6   :  { %v423_v19 = vmul.f32 %v718_v59, %v411_v55  ;;  %v720_v63 = vpop.eup %719 }
  0xf7   :  { %566 = vperm.xlu0 %679, %v437_v15   ;;  %v422_v25 = vmul.f32 %v720_v63, %v410_v58  ;;  %v436_v28 = vsub.f32 %v412_v53, %v428_v21 }
  0xf8   :  { %458 = vperm.xlu1 %680, %v420_v16   ;;  %v431_v20 = vmul.f32 %v423_v19, %v933_v18  ;;  %v414_v18 = vld [vmem:[%s1027_s2 + $0x8] sm:$0xf]  ;;  %s774_s2 = smov [#allocation5]  }
  0xf9   :  { %v434_v31 = vsub.f32 %v414_v18, %v426_v30  ;;  %v430_v13 = vmul.f32 %v422_v25, %v935_v27  ;;  %s661_s13 = sshll.u32 %s774_s2, 4  ;;  %s662_s13 = int_to_ptr.vmem [resolvable:$true] %s661_s13 }
  0xfa   :  { %v439_v23 = vsub.f32 %v415_v26, %v431_v20  ;;  %s743_s14 = scalar_lea.vmem %s662_s13, 1024  ;;  %p748_p9 = scmp.lt.s32.totalorder %s662_s13, %s662_s13 }
  0xfb   :  { %v438_v32 = vsub.f32 %v414_v18, %v430_v13  ;;  %p744_p8 = scmp.ne.s32.totalorder %s662_s13, %s743_s14  ;;  %p749_p10 = scmp.lt.s32.totalorder %s743_s14, %s743_s14 }
  0xfc   :  { %574 = vperm.xlu0 %679, %v439_v23   ;;  %462 = vperm.xlu1 %680, %v421_v6  }
  0xfd   :  { %p750_p11 = por %p749_p10, %p748_p9 }
  0xff   :  { %p751_p12 = pnand %p750_p11, %p744_p8 }
 0x100   :  { %466 = vperm.xlu1 %680, %v422_v25  }
 0x104   :  { %470 = vperm.xlu1 %680, %v423_v19  }
 0x108   :  { %546 = vperm.xlu1 %680, %v432_v29  }
 0x10c   :  { %554 = vperm.xlu1 %680, %v434_v31  }
 0x110   :  { %562 = vperm.xlu1 %680, %v436_v28  }
 0x114   :  { %570 = vperm.xlu1 %680, %v438_v32  }
 0x168   :  { %v447_v38 = vpop.permute.xlu1 %446 }
 0x169   :  { %v485_v14 = vrot.slane %v447_v38, %v477_v37 }
 0x16a   :  { %v443_v39 = vpop.permute.xlu0 %442 }
 0x16b   :  { %v537_v41 = vmul.f32 %v485_v14, %v824_v7  ;;  %v478_v4 = vrot.slane %v443_v39, %v477_v37 }
 0x16d   :  { %v536_v5 = vmul.f32 %v478_v4, %v812_v1 }
 0x16e   :  { %v551_v40 = vpop.permute.xlu0 %550 }
 0x16f   :  { %v451_v54 = vpop.permute.xlu1 %450  ;;  %v589_v42 = vrot.slane %v551_v40, %v477_v37 }
 0x170   :  { %v492_v6 = vrot.slane %v451_v54, %v477_v37 }
 0x171   :  { %v641_v43 = vadd.f32 %v589_v42, %v537_v41 }
 0x172   :  { %v559_v44 = vpop.permute.xlu0 %558 }
 0x173   :  { %649 = vst [vmem:[#allocation5 + $0x8] sm:$0xff] %v641_v43  ;;  %v455_v27 = vpop.permute.xlu1 %454  ;;  %v603_v50 = vrot.slane %v559_v44, %v477_v37 }
 0x174   :  { %v499_v45 = vrot.slane %v455_v27, %v477_v37 }
 0x176   :  { %v539_v47 = vmul.f32 %v499_v45, %v814_v2  ;;  %v567_v52 = vpop.permute.xlu0 %566 }
 0x177   :  { %v459_v51 = vpop.permute.xlu1 %458  ;;  %v617_v58 = vrot.slane %v567_v52, %v477_v37 }
 0x178   :  { %v643_v46 = vadd.f32 %v603_v50, %v539_v47  ;;  %v506_v59 = vrot.slane %v459_v51, %v477_v37 }
 0x17a   :  { %651 = vst [vmem:[#allocation5 + $0x18] sm:$0xff] %v643_v46  ;;  %v540_v23 = vmul.f32 %v506_v59, %v834_v12 }
 0x17b   :  { %v463_v55 = vpop.permute.xlu1 %462  ;;  %v575_v49 = vpop.permute.xlu0 %574 }
 0x17c   :  { %v513_v57 = vrot.slane %v463_v55, %v477_v37  ;;  %v631_v26 = vrot.slane %v575_v49, %v477_v37 }
 0x17e   :  { %v541_v60 = vmul.f32 %v513_v57, %v826_v8  ;;  %v538_v8 = vmul.f32 %v492_v6, %v810_v0 }
 0x17f   :  { %v467_v7 = vpop.permute.xlu1 %466 }
 0x180   :  { %v645_v61 = vadd.f32 %v617_v58, %v541_v60  ;;  %v520_v63 = vrot.slane %v467_v7, %v477_v37 }
 0x182   :  { %653 = vst [vmem:[#allocation5 + $0x28] sm:$0xff] %v645_v61  ;;  %v542_v3 = vmul.f32 %v520_v63, %v846_v22 }
 0x183   :  { %v471_v62 = vpop.permute.xlu1 %470 }
 0x184   :  { %v527_v56 = vrot.slane %v471_v62, %v477_v37 }
 0x186   :  { %v543_v2 = vmul.f32 %v527_v56, %v842_v17 }
 0x187   :  { %v547_v48 = vpop.permute.xlu1 %546 }
 0x188   :  { %v647_v9 = vadd.f32 %v631_v26, %v543_v2  ;;  %v582_v10 = vrot.slane %v547_v48, %v477_v37 }
 0x18a   :  { %655 = vst [vmem:[#allocation5 + $0x38] sm:$0xff] %v647_v9  ;;  %v640_v11 = vadd.f32 %v582_v10, %v536_v5 }
 0x18b   :  { %v555_v15 = vpop.permute.xlu1 %554 }
 0x18c   :  { %648 = vst [vmem:[#allocation5] sm:$0xff] %v640_v11  ;;  %v596_v16 = vrot.slane %v555_v15, %v477_v37 }
 0x18e   :  { %v642_v19 = vadd.f32 %v596_v16, %v538_v8 }
 0x18f   :  { %v563_v20 = vpop.permute.xlu1 %562 }
 0x190   :  { %650 = vst [vmem:[#allocation5 + $0x10] sm:$0xff] %v642_v19  ;;  %v610_v17 = vrot.slane %v563_v20, %v477_v37 }
 0x192   :  { %v644_v25 = vadd.f32 %v610_v17, %v540_v23 }
 0x193   :  { %v571_v1 = vpop.permute.xlu1 %570 }
 0x194   :  { %652 = vst [vmem:[#allocation5 + $0x20] sm:$0xff] %v644_v25  ;;  %v624_v53 = vrot.slane %v571_v1, %v477_v37 }
 0x196   :  { %v646_v29 = vadd.f32 %v624_v53, %v542_v3 }
 0x198   :  { %654 = vst [vmem:[#allocation5 + $0x30] sm:$0xff] %v646_v29 }
 0x199   :  { %754 = shalt.err (!%p751_p12)
}
 0x19a   :  { %s755_s17 = scalar_lea.hbm %s1028_s3, 1024 }
 0x19b   :  { %p756_p13 = scmp.ne.s32.totalorder %s1028_s3, %s755_s17  ;;  %p759_p0 = scmp.lt.u32.totalorder %s755_s17, %s1028_s3 }
 0x19d   :  { %p761_p1 = pnand %p759_p0, %p756_p13 }
 0x19f   :  { %764 = shalt.err (!%p761_p1)
}
 0x1a0   :  { %667 = dma.vmem_to_hbm [thread:$0]  %s662_s13, 1024, %s1028_s3, [#allocation4], %s770_s22, %s770_s22, %s771_s23  }
 0x1a1   :  { %767 = dma.done.wait [#allocation4], 1024  }
 0x1a2   :  { %768 = vsyncadd [#allocation4], 4294966272 }
 0x1a3   :  { %671 = vsyncpa [#allocation3], 1 }
 0x1a4   :  { %672 = vsyncpa [#allocation4], 1 }

</bundles_post_ra>
